<compile_context>
chip_gen: v6e
topology: v6e:2x2x1
jax: 0.10.0
libtpu: 0.0.40
codegen_flags: <defaults>
</compile_context>

<pallas_src>
import jax
import jax.numpy as jnp
from jax.experimental import pallas as pl
from jax.experimental.pallas import tpu as pltpu

K = 3           # hard-coded in the reference knn()
MAX_TILE = 512  # queries per grid step (multiple of 8); tiny VMEM footprint


def som_forward_kernel(x_ref, wt_ref, wn2_ref, p_ref, o_ref):
    # x_ref   : (BT, D)  queries for this tile, features on lanes
    # wt_ref  : (D, S)   weights transposed -> SOM units on lanes
    # wn2_ref : (1, S)   precomputed ||w||^2 per unit
    # p_ref   : (1, S)   per-unit probabilities (lane-dense row)
    # o_ref   : (BT, 1)  per-query scalar output
    x = x_ref[...]                                           # (BT, D) f32
    wt = wt_ref[...]                                         # (D, S)  f32
    wn2 = wn2_ref[...]                                       # (1, S)  f32
    probs = p_ref[...]                                       # (1, S)  f32

    # Squared Euclidean distance of every SOM unit to every query:
    # dist^2 = ||w||^2 + ||x||^2 - 2 * x·w ; cross term on the MXU.
    xw = jnp.dot(x, wt, preferred_element_type=jnp.float32)  # (BT, S)
    xn2 = jnp.sum(x * x, axis=-1, keepdims=True)             # (BT, 1)
    dist2 = jnp.maximum(wn2 + xn2 - 2.0 * xw, 0.0)           # clamp cancellation

    BT, S = dist2.shape
    iota = jax.lax.broadcasted_iota(jnp.int32, (BT, S), 1)
    probs_b = jnp.broadcast_to(probs, (BT, S))               # hoist broadcast

    # Iteratively extract the 3 smallest dist^2 per row (lowest-index tiebreak)
    # and the matching probabilities.  Selecting on dist^2 is identical to
    # selecting on the reference's softmax because sqrt and exp are monotone.
    work = dist2
    vals, prs = [], []
    for _ in range(K):
        mval = jnp.min(work, axis=-1, keepdims=True)                      # (BT,1)
        idx = jnp.min(jnp.where(work == mval, iota, S),
                      axis=-1, keepdims=True)                             # (BT,1)
        sel = iota == idx                                                 # (BT,S)
        pr = jnp.sum(jnp.where(sel, probs_b, jnp.float32(0.0)),
                     axis=-1, keepdims=True)                              # (BT,1)
        vals.append(mval)
        prs.append(pr)
        work = jnp.where(sel, jnp.float32(jnp.inf), work)

    # d_i = exp(dist_i) / sum_j exp(dist_j) over the 3 selected units.  The
    # global softmax normalizer cancels exactly; shifting by the *largest*
    # selected distance makes every exponent <= 0 (overflow-proof).
    d0 = jnp.sqrt(vals[0])
    d1 = jnp.sqrt(vals[1])
    d2 = jnp.sqrt(vals[2])                                   # d0 <= d1 <= d2
    e0 = jnp.exp(d0 - d2)
    e1 = jnp.exp(d1 - d2)
    e2 = jnp.ones_like(d2)                                   # exp(0)
    den = e0 + e1 + e2
    inv = pl.reciprocal(den, approx=True)                    # EUP slot
    inv = inv * (2.0 - den * inv)                            # 1 Newton step -> f32 acc.
    o_ref[...] = (prs[0] * e0 + prs[1] * e1 + prs[2] * e2) * inv


@jax.jit
def som_forward(weights, probabilities, x):
    """Pallas-backed SOM.forward(x, mode='marginal').

    weights       : (S, D)
    probabilities : (S,)
    x             : (B, D) batch of queries, or (D,) single query.
    Returns (B,) f32 (or a scalar for a single query).
    """
    single = x.ndim == 1
    xb = x.reshape(1, -1) if single else x
    B, D = xb.shape
    S = weights.shape[0]

    w = jnp.asarray(weights, jnp.float32)
    wt = w.T                                                  # (D, S) lane-dense
    wn2 = jnp.sum(w * w, axis=1).reshape(1, S)                # hoisted ||w||^2
    p_row = jnp.asarray(probabilities, jnp.float32).reshape(1, S)
    xq = jnp.asarray(xb, jnp.float32)                         # (B, D)

    # Pad the batch to a multiple of the tile (sublane granularity = 8).
    b_tile = min(((B + 7) // 8) * 8, MAX_TILE)
    b_pad = ((B + b_tile - 1) // b_tile) * b_tile
    if b_pad != B:
        xq = jnp.concatenate([xq, jnp.zeros((b_pad - B, D), jnp.float32)], axis=0)
    num_tiles = b_pad // b_tile

    out = pl.pallas_call(
        som_forward_kernel,
        grid=(num_tiles,),
        out_shape=jax.ShapeDtypeStruct((b_pad, 1), jnp.float32),
        in_specs=[
            pl.BlockSpec((b_tile, D), lambda i: (i, 0),
                         memory_space=pltpu.MemorySpace.VMEM),
            pl.BlockSpec((D, S), lambda i: (0, 0),
                         memory_space=pltpu.MemorySpace.VMEM),
            pl.BlockSpec((1, S), lambda i: (0, 0),
                         memory_space=pltpu.MemorySpace.VMEM),
            pl.BlockSpec((1, S), lambda i: (0, 0),
                         memory_space=pltpu.MemorySpace.VMEM),
        ],
        out_specs=pl.BlockSpec((b_tile, 1), lambda i: (i, 0),
                               memory_space=pltpu.MemorySpace.VMEM),
        compiler_params=pltpu.CompilerParams(
            # Only worth sharding across v7x TCs with >=2 substantial tiles.
            dimension_semantics=("parallel",) if num_tiles > 1 else ("arbitrary",)),
    )(xq, wt, wn2, p_row)

    res = out[:B, 0]
    return res[0] if single else res


def som_forward_ref(weights, probabilities, x):
    """Pure-JAX reference mirroring the PyTorch code (single query, k=3)."""
    dist = jnp.sqrt(jnp.sum((weights - x[None, :]) ** 2, axis=1))
    soft = jnp.exp(dist) / jnp.sum(jnp.exp(dist))
    neg_vals, idxs = jax.lax.top_k(-soft, K)     # 3 smallest
    vals = -neg_vals
    d = vals / jnp.sum(vals)
    return jnp.sum(probabilities[idxs] * d)


if __name__ == "__main__":
    # Small, TPU-friendly SOM configuration (constructor kwargs of the module).
    width, height, num_dim, num_classes = 8, 16, 32, 10
    size = width * height
    batch = 8

    key = jax.random.PRNGKey(0)
    kw, kp, kx = jax.random.split(key, 3)

    # weights = torch.rand(size, num_dim)
    weights = jax.random.uniform(kw, (size, num_dim), dtype=jnp.float32)
    # probabilities are zeros at __init__; use a deterministic non-trivial
    # distribution so the forward output is non-degenerate.
    probs = jax.random.uniform(kp, (size,), dtype=jnp.float32)
    probs = probs / jnp.sum(probs)
    x = jax.random.uniform(kx, (batch, num_dim), dtype=jnp.float32)

    out = som_forward(weights, probs, x)
    out = jax.block_until_ready(out)

    ref = jnp.stack([som_forward_ref(weights, probs, x[b]) for b in range(batch)])
    assert jnp.allclose(out, ref, rtol=1e-4, atol=1e-6), (out, ref)

    # TODO(synk): backward()/training-time weight & probability updates are
    # stateful host-side logic in the reference and are out of scope here.
    print("KERNEL_OK")
</pallas_src>

<mosaic_0001>
module attributes {stable_mosaic.version = 11 : i64} {
  func.func @som_forward_kernel(%arg0: i32, %arg1: memref<8x32xf32, #tpu.memory_space<vmem>>, %arg2: memref<32x128xf32, #tpu.memory_space<vmem>>, %arg3: memref<1x128xf32, #tpu.memory_space<vmem>>, %arg4: memref<1x128xf32, #tpu.memory_space<vmem>>, %arg5: memref<8x1xf32, #tpu.memory_space<vmem>>) attributes {dimension_semantics = [#tpu.dimension_semantics<arbitrary>], iteration_bounds = array<i64: 1>, scalar_prefetch = 0 : i64, scratch_operands = 0 : i64, tpu.core_type = #tpu.core_type<tc>, window_params = [{transform_indices = @transform_0, window_bounds = array<i64: 8, 32>}, {pipeline_mode = #tpu.pipeline_mode<synchronous>, transform_indices = @transform_1, window_bounds = array<i64: 32, 128>}, {pipeline_mode = #tpu.pipeline_mode<synchronous>, transform_indices = @transform_2, window_bounds = array<i64: 1, 128>}, {pipeline_mode = #tpu.pipeline_mode<synchronous>, transform_indices = @transform_3, window_bounds = array<i64: 1, 128>}, {transform_indices = @transform_4, window_bounds = array<i64: 8, 1>}]} {
    %c0 = arith.constant 0 : index
    %c0_0 = arith.constant 0 : index
    %0 = vector.load %arg1[%c0, %c0_0] : memref<8x32xf32, #tpu.memory_space<vmem>>, vector<8x32xf32>
    %c0_1 = arith.constant 0 : index
    %c0_2 = arith.constant 0 : index
    %1 = vector.load %arg2[%c0_1, %c0_2] : memref<32x128xf32, #tpu.memory_space<vmem>>, vector<32x128xf32>
    %c0_3 = arith.constant 0 : index
    %c0_4 = arith.constant 0 : index
    %2 = vector.load %arg3[%c0_3, %c0_4] : memref<1x128xf32, #tpu.memory_space<vmem>>, vector<1x128xf32>
    %c0_5 = arith.constant 0 : index
    %c0_6 = arith.constant 0 : index
    %3 = vector.load %arg4[%c0_5, %c0_6] : memref<1x128xf32, #tpu.memory_space<vmem>>, vector<1x128xf32>
    %cst = arith.constant dense<0.000000e+00> : vector<8x128xf32>
    %4 = tpu.matmul %0, %1, %cst {dimension_numbers = #tpu.dot_dimension_numbers<[1], [0], [0], [1], [0, 0, 1, 1], [], []>} : vector<8x32xf32>, vector<32x128xf32>, vector<8x128xf32> -> vector<8x128xf32>
    %5 = arith.mulf %0, %0 : vector<8x32xf32>
    %cst_7 = arith.constant dense<0.000000e+00> : vector<8xf32>
    %6 = vector.multi_reduction <add>, %5, %cst_7 [1] : vector<8x32xf32> to vector<8xf32>
    %7 = vector.shape_cast %6 : vector<8xf32> to vector<8x1xf32>
    %8 = vector.broadcast %2 : vector<1x128xf32> to vector<8x128xf32>
    %9 = vector.broadcast %7 : vector<8x1xf32> to vector<8x128xf32>
    %10 = arith.addf %8, %9 : vector<8x128xf32>
    %cst_8 = arith.constant 2.000000e+00 : f32
    %11 = vector.broadcast %cst_8 : f32 to vector<8x128xf32>
    %12 = arith.mulf %11, %4 : vector<8x128xf32>
    %13 = arith.subf %10, %12 : vector<8x128xf32>
    %cst_9 = arith.constant 0.000000e+00 : f32
    %14 = vector.broadcast %cst_9 : f32 to vector<8x128xf32>
    %15 = arith.maximumf %13, %14 : vector<8x128xf32>
    %16 = tpu.iota {dimensions = array<i32: 1>} : vector<8x128xi32>
    %17 = vector.shape_cast %3 : vector<1x128xf32> to vector<1x128xf32>
    %18 = vector.broadcast %17 : vector<1x128xf32> to vector<8x128xf32>
    %cst_10 = arith.constant dense<0x7F800000> : vector<8xf32>
    %19 = vector.multi_reduction <minimumf>, %15, %cst_10 [1] : vector<8x128xf32> to vector<8xf32>
    %20 = vector.shape_cast %19 : vector<8xf32> to vector<8x1xf32>
    %21 = vector.broadcast %20 : vector<8x1xf32> to vector<8x128xf32>
    %22 = arith.cmpf oeq, %15, %21 : vector<8x128xf32>
    %c128_i32 = arith.constant 128 : i32
    %23 = vector.broadcast %c128_i32 : i32 to vector<8x128xi32>
    %24 = arith.select %22, %16, %23 : vector<8x128xi1>, vector<8x128xi32>
    %cst_11 = arith.constant dense<2147483647> : vector<8xi32>
    %25 = vector.multi_reduction <minsi>, %24, %cst_11 [1] : vector<8x128xi32> to vector<8xi32>
    %26 = vector.shape_cast %25 : vector<8xi32> to vector<8x1xi32>
    %27 = vector.broadcast %26 : vector<8x1xi32> to vector<8x128xi32>
    %28 = arith.cmpi eq, %16, %27 : vector<8x128xi32>
    %cst_12 = arith.constant 0.000000e+00 : f32
    %29 = vector.broadcast %cst_12 : f32 to vector<8x128xf32>
    %30 = arith.select %28, %18, %29 : vector<8x128xi1>, vector<8x128xf32>
    %cst_13 = arith.constant dense<0.000000e+00> : vector<8xf32>
    %31 = vector.multi_reduction <add>, %30, %cst_13 [1] : vector<8x128xf32> to vector<8xf32>
    %32 = vector.shape_cast %31 : vector<8xf32> to vector<8x1xf32>
    %cst_14 = arith.constant 0x7F800000 : f32
    %33 = vector.broadcast %cst_14 : f32 to vector<8x128xf32>
    %34 = arith.select %28, %33, %15 : vector<8x128xi1>, vector<8x128xf32>
    %cst_15 = arith.constant dense<0x7F800000> : vector<8xf32>
    %35 = vector.multi_reduction <minimumf>, %34, %cst_15 [1] : vector<8x128xf32> to vector<8xf32>
    %36 = vector.shape_cast %35 : vector<8xf32> to vector<8x1xf32>
    %37 = vector.broadcast %36 : vector<8x1xf32> to vector<8x128xf32>
    %38 = arith.cmpf oeq, %34, %37 : vector<8x128xf32>
    %c128_i32_16 = arith.constant 128 : i32
    %39 = vector.broadcast %c128_i32_16 : i32 to vector<8x128xi32>
    %40 = arith.select %38, %16, %39 : vector<8x128xi1>, vector<8x128xi32>
    %cst_17 = arith.constant dense<2147483647> : vector<8xi32>
    %41 = vector.multi_reduction <minsi>, %40, %cst_17 [1] : vector<8x128xi32> to vector<8xi32>
    %42 = vector.shape_cast %41 : vector<8xi32> to vector<8x1xi32>
    %43 = vector.broadcast %42 : vector<8x1xi32> to vector<8x128xi32>
    %44 = arith.cmpi eq, %16, %43 : vector<8x128xi32>
    %cst_18 = arith.constant 0.000000e+00 : f32
    %45 = vector.broadcast %cst_18 : f32 to vector<8x128xf32>
    %46 = arith.select %44, %18, %45 : vector<8x128xi1>, vector<8x128xf32>
    %cst_19 = arith.constant dense<0.000000e+00> : vector<8xf32>
    %47 = vector.multi_reduction <add>, %46, %cst_19 [1] : vector<8x128xf32> to vector<8xf32>
    %48 = vector.shape_cast %47 : vector<8xf32> to vector<8x1xf32>
    %cst_20 = arith.constant 0x7F800000 : f32
    %49 = vector.broadcast %cst_20 : f32 to vector<8x128xf32>
    %50 = arith.select %44, %49, %34 : vector<8x128xi1>, vector<8x128xf32>
    %cst_21 = arith.constant dense<0x7F800000> : vector<8xf32>
    %51 = vector.multi_reduction <minimumf>, %50, %cst_21 [1] : vector<8x128xf32> to vector<8xf32>
    %52 = vector.shape_cast %51 : vector<8xf32> to vector<8x1xf32>
    %53 = vector.broadcast %52 : vector<8x1xf32> to vector<8x128xf32>
    %54 = arith.cmpf oeq, %50, %53 : vector<8x128xf32>
    %c128_i32_22 = arith.constant 128 : i32
    %55 = vector.broadcast %c128_i32_22 : i32 to vector<8x128xi32>
    %56 = arith.select %54, %16, %55 : vector<8x128xi1>, vector<8x128xi32>
    %cst_23 = arith.constant dense<2147483647> : vector<8xi32>
    %57 = vector.multi_reduction <minsi>, %56, %cst_23 [1] : vector<8x128xi32> to vector<8xi32>
    %58 = vector.shape_cast %57 : vector<8xi32> to vector<8x1xi32>
    %59 = vector.broadcast %58 : vector<8x1xi32> to vector<8x128xi32>
    %60 = arith.cmpi eq, %16, %59 : vector<8x128xi32>
    %cst_24 = arith.constant 0.000000e+00 : f32
    %61 = vector.broadcast %cst_24 : f32 to vector<8x128xf32>
    %62 = arith.select %60, %18, %61 : vector<8x128xi1>, vector<8x128xf32>
    %cst_25 = arith.constant dense<0.000000e+00> : vector<8xf32>
    %63 = vector.multi_reduction <add>, %62, %cst_25 [1] : vector<8x128xf32> to vector<8xf32>
    %64 = vector.shape_cast %63 : vector<8xf32> to vector<8x1xf32>
    %65 = math.sqrt %20 : vector<8x1xf32>
    %66 = math.sqrt %36 : vector<8x1xf32>
    %67 = math.sqrt %52 : vector<8x1xf32>
    %68 = arith.subf %65, %67 : vector<8x1xf32>
    %69 = math.exp %68 : vector<8x1xf32>
    %70 = arith.subf %66, %67 : vector<8x1xf32>
    %71 = math.exp %70 : vector<8x1xf32>
    %cst_26 = arith.constant 1.000000e+00 : f32
    %72 = vector.broadcast %cst_26 : f32 to vector<8x1xf32>
    %73 = arith.addf %69, %71 : vector<8x1xf32>
    %74 = arith.addf %73, %72 : vector<8x1xf32>
    %75 = tpu.reciprocal %74 {approx = true} : vector<8x1xf32> -> vector<8x1xf32>
    %76 = arith.mulf %74, %75 : vector<8x1xf32>
    %cst_27 = arith.constant 2.000000e+00 : f32
    %77 = vector.broadcast %cst_27 : f32 to vector<8x1xf32>
    %78 = arith.subf %77, %76 : vector<8x1xf32>
    %79 = arith.mulf %75, %78 : vector<8x1xf32>
    %80 = arith.mulf %32, %69 : vector<8x1xf32>
    %81 = arith.mulf %48, %71 : vector<8x1xf32>
    %82 = arith.addf %80, %81 : vector<8x1xf32>
    %83 = arith.mulf %64, %72 : vector<8x1xf32>
    %84 = arith.addf %82, %83 : vector<8x1xf32>
    %85 = arith.mulf %84, %79 : vector<8x1xf32>
    %c0_28 = arith.constant 0 : index
    %c0_29 = arith.constant 0 : index
    %86 = vector.load %arg5[%c0_28, %c0_29] : memref<8x1xf32, #tpu.memory_space<vmem>>, vector<8x1xf32>
    tpu.vector_store %arg5[%c0_28, %c0_29], %85 {strides = array<i32>} : memref<8x1xf32, #tpu.memory_space<vmem>>, vector<8x1xf32>,
    return
  }
  func.func @transform_0(%arg0: i32) -> (i32, i32) {
    %c0_i32 = arith.constant 0 : i32
    %c0_i32_0 = arith.constant 0 : i32
    return %arg0, %c0_i32 : i32, i32
  }
  func.func @transform_1(%arg0: i32) -> (i32, i32) {
    %c0_i32 = arith.constant 0 : i32
    %c0_i32_0 = arith.constant 0 : i32
    %c0_i32_1 = arith.constant 0 : i32
    return %c0_i32, %c0_i32_0 : i32, i32
  }
  func.func @transform_2(%arg0: i32) -> (i32, i32) {
    %c0_i32 = arith.constant 0 : i32
    %c0_i32_0 = arith.constant 0 : i32
    %c0_i32_1 = arith.constant 0 : i32
    return %c0_i32, %c0_i32_0 : i32, i32
  }
  func.func @transform_3(%arg0: i32) -> (i32, i32) {
    %c0_i32 = arith.constant 0 : i32
    %c0_i32_0 = arith.constant 0 : i32
    %c0_i32_1 = arith.constant 0 : i32
    return %c0_i32, %c0_i32_0 : i32, i32
  }
  func.func @transform_4(%arg0: i32) -> (i32, i32) {
    %c0_i32 = arith.constant 0 : i32
    %c0_i32_0 = arith.constant 0 : i32
    return %arg0, %c0_i32 : i32, i32
  }
}

</mosaic_0001>

<bundles_post_ra>
// kernel: som_forward.1
= control target key start
LH: loop header
LB: loop body
LE: loop exit
PB: predicated region body
PF: predicated region fallthrough
CT: control target
= control target key end

     0   :  { %v265_v0 = vmov 0.0   ;;  %vm266_vm0 = vmmov 0   ;;  %vm24_vm1 = vcmask 261120   ;;  %v112_v16 = vlaneseq  ;;  %s350_s1 = inlined_call_operand.vmem [shape: f32[32,128], index: 1, kind: input, shape index: {}]   ;;  %s351_s0 = inlined_call_operand.vmem [shape: f32[8,32], index: 0, kind: input, shape index: {}]   ;;  %s352_s2 = inlined_call_operand.vmem [shape: f32[1,128], index: 2, kind: input, shape index: {}]   ;;  %s353_s3 = inlined_call_operand.vmem [shape: f32[1,128], index: 3, kind: input, shape index: {}]   ;;  %s354_s4 = inlined_call_operand.vmem [shape: f32[8,1], index: 4, kind: output, shape index: {}]  }
   0x1   :  { %240 = vmatprep.subr.mxu0 %v265_v0  ;;  %v21_v1 = vld [vmem:[%s350_s1 + $0x18] sm:$0xff]  ;;  %v20_v2 = vld [vmem:[%s350_s1 + $0x10] sm:$0xff]  ;;  %248 = vmatprep.mubr.msk.f32.mxu0 %vm266_vm0, %v265_v0  ;;  %v17_v3 = vld [vmem:[%s351_s0] sm:$0xff] }
   0x2   :  { %241 = vmatpush3.msra.mxu0 %v21_v1  ;;  %v19_v4 = vld [vmem:[%s350_s1 + $0x8] sm:$0xff]  ;;  %v98_v5 = vmul.f32 %v17_v3, %v17_v3  ;;  %v18_v6 = vld [vmem:[%s350_s1] sm:$0xff]  ;;  %v310_v17 = vand.u32 127, %v112_v16 }
   0x3   :  { %242 = vmatprep.subr.mxu0 %v265_v0  ;;  %v233_v8 = vld [vmem:[%s352_s2] ss:$0 sm:$0xff] }
   0x4   :  { %243 = vmatpush3.msra.mxu0 %v20_v2  ;;  %v99_v7 = vsel %vm24_vm1, %v98_v5, 0.0  ;;  %v234_v50 = vld [vmem:[%s353_s3] ss:$0 sm:$0xff] }
   0x5   :  { %244 = vmatprep.subr.mxu0 %v265_v0  ;;  %100 = vadd.xlane.f32.xlu0 %v99_v7 }
   0x6   :  { %245 = vmatpush3.msra.mxu0 %v19_v4 }
   0x7   :  { %246 = vmatprep.subr.mxu0 %v265_v0 }
   0x8   :  { %247 = vmatpush3.msra.mxu0 %v18_v6 }
   0x9   :  { %249 = vmatmul.mubr.msk.f32.vlgmr.msra.gmra.mxu0 %vm24_vm1, %v17_v3  ;;  %vm226_vm1 = vcmask 7168  }
  0x8e   :  { %v101_v9 = vpop.xlane.xlu0 %100 }
  0x8f   :  { %v108_v10 = vadd.f32 %v233_v8, %v101_v9 }
  0xc9   :  { %v94_v11 = vpop.f32.mrf.mxu0 }
  0xca   :  { %v109_v12 = vmul.f32 2.0, %v94_v11 }
  0xcb   :  { %v250_v13 = vpop.f32.mrf.mxu0 }
  0xcc   :  { %v110_v14 = vsub.f32 %v108_v10, %v109_v12 }
  0xce   :  { %v111_v15 = vmax.f32 %v110_v14, 0.0 }
  0xd0   :  { %120 = vmin.xlane.f32.xlu0 %v111_v15 }
 0x159   :  { %v312_v18 = vpop.xlane.xlu0 %120 }
 0x15a   :  { %vm122_vm2 = vcmp.eq.f32.partialorder %v111_v15, %v312_v18  ;;  %vm190_vm12 = vcmp.eq.f32.partialorder %v312_v18, inf  ;;  %v193_v8 = vand.u32 2147483648, %v312_v18  ;;  %vm192_vm15 = vcmp.eq.f32.partialorder %v312_v18, 0.0 }
 0x15b   :  { %v123_v19 = vsel %vm122_vm2, %v310_v17, 128 }
 0x15c   :  { %v125_v20 = vshra.s32 %v123_v19, 16  ;;  %v124_v22 = vand.u32 65535, %v123_v19 }
 0x15e   :  { %v127_v21 = vcvt.s32.f32 %v125_v20  ;;  %v126_v24 = vcvt.s32.f32 %v124_v22 }
 0x160   :  { %128 = vmin.xlane.f32.xlu1 %v127_v21 }
 0x1e9   :  { %v129_v23 = vpop.xlane.xlu1 %128 }
 0x1ea   :  { %vm130_vm3 = vcmp.eq.f32.partialorder %v127_v21, %v129_v23  ;;  %v135_v26 = vcvt.f32.s32 %v129_v23 }
 0x1eb   :  { %v131_v25 = vsel %vm130_vm3, %v126_v24, inf }
 0x1ec   :  { %132 = vmin.xlane.f32.xlu1 %v131_v25  ;;  %v136_v28 = vshll.u32 %v135_v26, 16 }
 0x275   :  { %v133_v27 = vpop.xlane.xlu1 %132 }
 0x276   :  { %v134_v29 = vcvt.f32.s32 %v133_v27 }
 0x278   :  { %v137_v30 = vadd.s32 %v136_v28, %v134_v29 }
 0x27a   :  { %vm138_vm4 = vcmp.eq.s32.totalorder %v310_v17, %v137_v30 }
 0x27b   :  { %v142_v31 = vsel %vm138_vm4, inf, %v111_v15  ;;  %v139_v51 = vsel %vm138_vm4, %v234_v50, 0.0 }
 0x27c   :  { %143 = vmin.xlane.f32.xlu0 %v142_v31 }
 0x305   :  { %v319_v32 = vpop.xlane.xlu0 %143 }
 0x306   :  { %vm145_vm5 = vcmp.eq.f32.partialorder %v142_v31, %v319_v32  ;;  %vm197_vm13 = vcmp.eq.f32.partialorder %v319_v32, inf  ;;  %v200_v11 = vand.u32 2147483648, %v319_v32  ;;  %vm199_vm0 = vcmp.eq.f32.partialorder %v319_v32, 0.0 }
 0x307   :  { %v146_v33 = vsel %vm145_vm5, %v310_v17, 128 }
 0x308   :  { %v148_v34 = vshra.s32 %v146_v33, 16  ;;  %v147_v36 = vand.u32 65535, %v146_v33 }
 0x30a   :  { %v150_v35 = vcvt.s32.f32 %v148_v34  ;;  %v149_v38 = vcvt.s32.f32 %v147_v36 }
 0x30c   :  { %151 = vmin.xlane.f32.xlu1 %v150_v35 }
 0x395   :  { %v152_v37 = vpop.xlane.xlu1 %151 }
 0x396   :  { %vm153_vm6 = vcmp.eq.f32.partialorder %v150_v35, %v152_v37  ;;  %v158_v40 = vcvt.f32.s32 %v152_v37 }
 0x397   :  { %v154_v39 = vsel %vm153_vm6, %v149_v38, inf }
 0x398   :  { %155 = vmin.xlane.f32.xlu0 %v154_v39  ;;  %v159_v42 = vshll.u32 %v158_v40, 16 }
 0x421   :  { %v156_v41 = vpop.xlane.xlu0 %155 }
 0x422   :  { %v157_v43 = vcvt.f32.s32 %v156_v41 }
 0x424   :  { %v160_v44 = vadd.s32 %v159_v42, %v157_v43 }
 0x426   :  { %vm161_vm7 = vcmp.eq.s32.totalorder %v310_v17, %v160_v44 }
 0x427   :  { %v165_v45 = vsel %vm161_vm7, inf, %v142_v31  ;;  %v162_v56 = vsel %vm161_vm7, %v234_v50, 0.0 }
 0x428   :  { %166 = vmin.xlane.f32.xlu1 %v165_v45 }
 0x4b1   :  { %v167_v46 = vpop.xlane.xlu1 %166 }
 0x4b2   :  { %vm168_vm8 = vcmp.eq.f32.partialorder %v165_v45, %v167_v46  ;;  %253 = vrsqrt.f32 %v167_v46  ;;  %vm204_vm11 = vcmp.eq.f32.partialorder %v167_v46, inf  ;;  %v207_v6 = vand.u32 2147483648, %v167_v46 }
 0x4b3   :  { %v169_v47 = vsel %vm168_vm8, %v310_v17, 128  ;;  %255 = vrsqrt.f32 %v312_v18  ;;  %vm206_vm14 = vcmp.eq.f32.partialorder %v167_v46, 0.0 }
 0x4b4   :  { %v171_v48 = vshra.s32 %v169_v47, 16  ;;  %v170_v52 = vand.u32 65535, %v169_v47  ;;  %257 = vrsqrt.f32 %v319_v32 }
 0x4b6   :  { %v173_v49 = vcvt.s32.f32 %v171_v48  ;;  %v172_v54 = vcvt.s32.f32 %v170_v52 }
 0x4b8   :  { %174 = vmin.xlane.f32.xlu0 %v173_v49 }
 0x4bc   :  { %140 = vadd.xlane.f32.xlu0 %v139_v51 }
 0x4bf   :  { %v254_v63 = vpop.eup %253 }
 0x4c0   :  { %v256_v0 = vpop.eup %255  ;;  %v203_v2 = vmul.f32 %v254_v63, %v167_v46 }
 0x4c1   :  { %v258_v1 = vpop.eup %257  ;;  %v189_v3 = vmul.f32 %v256_v0, %v312_v18 }
 0x4c2   :  { %v196_v4 = vmul.f32 %v258_v1, %v319_v32  ;;  %v205_v5 = vsel %vm204_vm11, %v167_v46, %v203_v2 }
 0x4c3   :  { %v191_v7 = vsel %vm190_vm12, %v312_v18, %v189_v3  ;;  %v208_v10 = vsel %vm206_vm14, %v207_v6, %v205_v5 }
 0x4c4   :  { %v198_v9 = vsel %vm197_vm13, %v319_v32, %v196_v4  ;;  %v194_v12 = vsel %vm192_vm15, %v193_v8, %v191_v7 }
 0x4c5   :  { %v209_v13 = vsub.f32 %v194_v12, %v208_v10  ;;  %v201_v14 = vsel %vm199_vm0, %v200_v11, %v198_v9 }
 0x4c6   :  { %v212_v15 = vsub.f32 %v201_v14, %v208_v10 }
 0x4c7   :  { %v210_v16 = vmul.f32 1.442695, %v209_v13 }
 0x4c9   :  { %259 = vpow2.f32 %v210_v16 }
 0x4d6   :  { %v260_v19 = vpop.eup %259 }
 0x541   :  { %v175_v53 = vpop.xlane.xlu0 %174 }
 0x542   :  { %vm176_vm9 = vcmp.eq.f32.partialorder %v173_v49, %v175_v53  ;;  %v181_v57 = vcvt.f32.s32 %v175_v53 }
 0x543   :  { %v177_v55 = vsel %vm176_vm9, %v172_v54, inf }
 0x544   :  { %178 = vmin.xlane.f32.xlu1 %v177_v55  ;;  %v182_v59 = vshll.u32 %v181_v57, 16 }
 0x545   :  { %v141_v25 = vpop.xlane.xlu0 %140 }
 0x546   :  { %v221_v27 = vmul.f32 %v260_v19, %v141_v25 }
 0x548   :  { %163 = vadd.xlane.f32.xlu1 %v162_v56 }
 0x5cd   :  { %v179_v58 = vpop.xlane.xlu1 %178 }
 0x5ce   :  { %v180_v60 = vcvt.f32.s32 %v179_v58 }
 0x5d0   :  { %v183_v61 = vadd.s32 %v182_v59, %v180_v60 }
 0x5d1   :  { %v164_v24 = vpop.xlane.xlu1 %163 }
 0x5d2   :  { %vm184_vm10 = vcmp.eq.s32.totalorder %v310_v17, %v183_v61  ;;  %v213_v17 = vmul.f32 1.442695, %v212_v15 }
 0x5d3   :  { %v185_v62 = vsel %vm184_vm10, %v234_v50, 0.0 }
 0x5d4   :  { %186 = vadd.xlane.f32.xlu0 %v185_v62  ;;  %261 = vpow2.f32 %v213_v17 }
 0x5e1   :  { %v262_v20 = vpop.eup %261 }
 0x5e2   :  { %v215_v21 = vadd.f32 %v262_v20, %v260_v19  ;;  %v222_v26 = vmul.f32 %v262_v20, %v164_v24 }
 0x5e4   :  { %v216_v22 = vadd.f32 1.0, %v215_v21  ;;  %v223_v29 = vadd.f32 %v222_v26, %v221_v27 }
 0x5e6   :  { %263 = vrcp.f32 %v216_v22 }
 0x5f3   :  { %v264_v23 = vpop.eup %263 }
 0x5f4   :  { %v218_v18 = vmul.f32 %v264_v23, %v216_v22 }
 0x5f6   :  { %v219_v28 = vsub.f32 2.0, %v218_v18 }
 0x5f8   :  { %v220_v31 = vmul.f32 %v264_v23, %v219_v28 }
 0x65d   :  { %v187_v30 = vpop.xlane.xlu0 %186 }
 0x65e   :  { %v224_v32 = vadd.f32 %v223_v29, %v187_v30 }
 0x660   :  { %v225_v33 = vmul.f32 %v224_v32, %v220_v31 }
 0x662   :  { %227 = vst.msk [vmem:[%s354_s4] sm:$0xff] %vm226_vm1, %v225_v33 }

</bundles_post_ra>
